<compile_context>
chip_gen: v6e
topology: v6e:2x2x1
jax: 0.10.0
libtpu: 0.0.40
codegen_flags: <defaults>
</compile_context>

<pallas_src>
import functools

import jax
import jax.numpy as jnp
from jax.experimental import pallas as pl
from jax.experimental.pallas import tpu as pltpu


# ---------------------------------------------------------------------------
# Stage 1: spatial-sum reduction kernel.
# ---------------------------------------------------------------------------
def _spatial_sum_kernel(x_ref, acc_ref, *, hw, hw_tile, tiles_per_split,
                        num_hw_tiles, mask_last_tile):
    """x_ref: (bc_tile, hw_tile) block. acc_ref: (1, bc_tile, 128) f32 block."""
    s = pl.program_id(0)              # HW split index (parallel)
    t = pl.program_id(2)              # HW tile within split (reduction axis)

    @pl.when(t == 0)
    def _init():
        acc_ref[...] = jnp.zeros_like(acc_ref)

    n_chunks = hw_tile // 128

    def _accumulate(masked):
        partial = None
        for j in range(n_chunks):
            if masked:
                # Inside the masked branch the tile is statically the last
                # one, so per-chunk column bases are static Python ints.
                base = (num_hw_tiles - 1) * hw_tile + j * 128
                if base >= hw:                       # chunk fully OOB: skip
                    continue
            # Lane-aligned static slice -> clean vector loads; cast + add
            # per chunk keeps temporaries small and the work on the VPU.
            chunk = x_ref[:, j * 128:(j + 1) * 128].astype(jnp.float32)
            if masked and base + 128 > hw:           # only the ragged chunk
                col = base + jax.lax.broadcasted_iota(jnp.int32, (1, 128), 1)
                chunk = jnp.where(col < hw, chunk, 0.0)
            partial = chunk if partial is None else partial + chunk
        acc_ref[...] += partial[None, :, :]

    if mask_last_tile:
        g = s * tiles_per_split + t                  # global HW tile index
        is_ragged = g == num_hw_tiles - 1

        @pl.when(jnp.logical_not(is_ragged))
        def _full():
            _accumulate(masked=False)

        @pl.when(is_ragged)
        def _ragged():
            _accumulate(masked=True)
    else:
        _accumulate(masked=False)


# ---------------------------------------------------------------------------
# Stage 2: one-shot MLP + BatchNorm1d micro-kernel on the (B, C) means.
# ---------------------------------------------------------------------------
def _mlp_bn_kernel(y_ref, w1_ref, b1_ref, w2_ref, b2_ref, gamma_ref, beta_ref,
                   out_ref):
    y = y_ref[...]
    h = jnp.dot(y, w1_ref[...], preferred_element_type=jnp.float32) + b1_ref[...]
    h = jnp.maximum(h, 0.0)
    y2 = jnp.dot(h, w2_ref[...], preferred_element_type=jnp.float32) + b2_ref[...]
    # BatchNorm1d: training-mode batch statistics (biased variance), eps=1e-5.
    # TODO(synk): running_mean / running_var state (eval mode + momentum update) not modeled.
    mu = jnp.mean(y2, axis=0, keepdims=True)
    var = jnp.mean((y2 - mu) ** 2, axis=0, keepdims=True)
    gate = (y2 - mu) * jax.lax.rsqrt(var + 1e-5) * gamma_ref[...] + beta_ref[...]
    out_ref[...] = gate.astype(out_ref.dtype)


# ---------------------------------------------------------------------------
# Tiling / VMEM sizing helpers.
# ---------------------------------------------------------------------------
def _vmem_capacity_bytes():
    try:
        info = pltpu.get_tpu_info()
        cap = getattr(info, "vmem_capacity_bytes", None)
        if cap:
            return int(cap)
    except Exception:
        pass
    return 64 * 1024 * 1024   # conservative fallback (v7x per-core VMEM)


def _pick_tiles(bc, hw, itemsize, budget_bytes, max_lanes, max_rows):
    """Pick (bc_tile, hw_tile) so the double-buffered x block fits the budget."""
    hw_padded = ((hw + 127) // 128) * 128
    # Lane (HW) tile first: as wide as the budget allows for a minimal 8-row
    # block, capped to bound the statically unrolled per-chunk loop.
    lanes_cap = budget_bytes // (2 * 8 * itemsize)
    lanes_cap = min(max(128, (lanes_cap // 128) * 128), 16384)
    if max_lanes is not None:
        lanes_cap = min(lanes_cap, max(128, (max_lanes // 128) * 128))
    hw_tile = min(hw_padded, lanes_cap)
    # Row (B*C) tile from the remaining budget.
    rows_cap = budget_bytes // (2 * hw_tile * itemsize)
    rows_cap = max(8, (rows_cap // 8) * 8)
    if max_rows is not None:
        rows_cap = min(rows_cap, max(8, (max_rows // 8) * 8))
    bc_tile = bc if bc <= rows_cap else rows_cap
    return bc_tile, hw_tile


# ---------------------------------------------------------------------------
# Wrapper.
# ---------------------------------------------------------------------------
def channel_gate(x, w1, b1, w2, b2, gamma, beta, *, expand=True,
                 max_lanes_per_tile=None, max_rows_per_tile=None):
    b, c, h, w = x.shape
    hw = h * w
    bc = b * c
    itemsize = x.dtype.itemsize
    x_flat = x.reshape(bc, hw)

    cap = _vmem_capacity_bytes()
    # Generation-aware streaming budget for the double-buffered x block:
    # ~24 MiB on v7x (64 MiB VMEM), 32 MiB on v5e/v6e (128 MiB VMEM).
    budget = max(8 * 1024 * 1024, min(3 * cap // 8, 32 * 1024 * 1024))

    bc_tile, hw_tile = _pick_tiles(bc, hw, itemsize, budget,
                                   max_lanes_per_tile, max_rows_per_tile)
    num_hw_tiles = -(-hw // hw_tile)
    bc_blocks = -(-bc // bc_tile)
    mask_last_tile = (hw % hw_tile) != 0

    # 2-way parallel HW split (for v7x's second TensorCore) only when the
    # B*C axis cannot provide the parallelism and the split is exact.
    n_splits = 2 if (bc_blocks == 1 and num_hw_tiles >= 2
                     and num_hw_tiles % 2 == 0) else 1
    tiles_per_split = num_hw_tiles // n_splits

    kernel = functools.partial(
        _spatial_sum_kernel, hw=hw, hw_tile=hw_tile,
        tiles_per_split=tiles_per_split, num_hw_tiles=num_hw_tiles,
        mask_last_tile=mask_last_tile)

    out_bytes = n_splits * bc * 128 * 4
    vmem_limit = (2 * bc_tile * hw_tile * itemsize
                  + 2 * bc_tile * 128 * 4 + 8 * 1024 * 1024)
    vmem_limit = int(min(max(vmem_limit, 16 * 1024 * 1024),
                         cap - 4 * 1024 * 1024))

    partials = pl.pallas_call(
        kernel,
        out_shape=jax.ShapeDtypeStruct((n_splits, bc, 128), jnp.float32),
        grid_spec=pltpu.PrefetchScalarGridSpec(
            num_scalar_prefetch=0,
            grid=(n_splits, bc_blocks, tiles_per_split),
            in_specs=[
                pl.BlockSpec((bc_tile, hw_tile),
                             lambda s, i, t: (i, s * tiles_per_split + t)),
            ],
            out_specs=pl.BlockSpec((1, bc_tile, 128),
                                   lambda s, i, t: (s, i, 0)),
        ),
        compiler_params=pltpu.CompilerParams(
            dimension_semantics=("parallel", "parallel", "arbitrary"),
            vmem_limit_bytes=vmem_limit),
        cost_estimate=pl.CostEstimate(
            flops=bc * hw, transcendentals=0,
            bytes_accessed=bc * hw * itemsize + out_bytes),
    )(x_flat)

    # Tiny combine: cross-split + cross-lane reduce on B*C*128 floats, then
    # the channel mean (AdaptiveAvgPool2d(1)).
    y = (jnp.sum(partials, axis=(0, 2)) * (1.0 / hw)).reshape(b, c)

    gate = pl.pallas_call(
        _mlp_bn_kernel,
        out_shape=jax.ShapeDtypeStruct((b, c), x.dtype),
    )(y, w1, b1, w2, b2, gamma, beta)

    if not expand:
        return gate.reshape(b, c, 1, 1)
    # PyTorch returns a broadcast *view*; under jit this fuses into the
    # consumer.  Prefer expand=False when applying the gate yourself so the
    # information-free (B, C, H, W) tensor is never written to HBM.
    return jnp.broadcast_to(gate[:, :, None, None], (b, c, h, w))


def channel_gate_ref(x, w1, b1, w2, b2, gamma, beta):
    """Pure-JAX reference of the PyTorch module (training-mode BN)."""
    b, c, h, w = x.shape
    y = jnp.mean(x.reshape(b, c, -1).astype(jnp.float32), axis=-1)
    hid = jnp.maximum(y @ w1 + b1, 0.0)
    y2 = hid @ w2 + b2
    mu = jnp.mean(y2, axis=0, keepdims=True)
    var = jnp.mean((y2 - mu) ** 2, axis=0, keepdims=True)
    g = (y2 - mu) * jax.lax.rsqrt(var + 1e-5) * gamma + beta
    return jnp.broadcast_to(g.astype(x.dtype)[:, :, None, None], (b, c, h, w))


if __name__ == "__main__":
    # HW = 225 (not a tile multiple) exercises the ragged-tile masking path.
    B, C, H, W = 2, 64, 15, 15
    reduction = 16
    Cr = C // reduction

    key = jax.random.PRNGKey(0)
    kx, kw1, kb1, kw2, kb2 = jax.random.split(key, 5)

    x = jax.random.normal(kx, (B, C, H, W), jnp.float32)

    # nn.Linear-style init U(-1/sqrt(fan_in), 1/sqrt(fan_in)).
    bound1 = 1.0 / (C ** 0.5)
    w1 = jax.random.uniform(kw1, (C, Cr), jnp.float32, -bound1, bound1)
    b1 = jax.random.uniform(kb1, (1, Cr), jnp.float32, -bound1, bound1)
    bound2 = 1.0 / (Cr ** 0.5)
    w2 = jax.random.uniform(kw2, (Cr, C), jnp.float32, -bound2, bound2)
    b2 = jax.random.uniform(kb2, (1, C), jnp.float32, -bound2, bound2)

    # BatchNorm1d affine defaults.
    gamma = jnp.ones((1, C), jnp.float32)
    beta = jnp.zeros((1, C), jnp.float32)

    ref = jax.block_until_ready(channel_gate_ref(x, w1, b1, w2, b2, gamma, beta))

    # Three tiling configurations:
    #   1) default sizing (single padded HW tile, ragged-mask path)
    #   2) forced 128-lane / 64-row blocks -> grid (1, 2, 2), B*C blocking
    #   3) forced 128-lane tiles, full B*C rows -> 2-way parallel HW split
    configs = [
        dict(),
        dict(max_lanes_per_tile=128, max_rows_per_tile=64),
        dict(max_lanes_per_tile=128),
    ]
    for cfg in configs:
        fn = jax.jit(functools.partial(channel_gate, **cfg))
        out = jax.block_until_ready(fn(x, w1, b1, w2, b2, gamma, beta))
        assert out.shape == (B, C, H, W)
        assert out.dtype == x.dtype
        err = float(jnp.max(jnp.abs(out - ref)))
        assert jnp.allclose(out, ref, atol=2e-4, rtol=2e-4), (cfg, err)

    print("KERNEL_OK")
</pallas_src>

<mosaic_0001>
module attributes {stable_mosaic.version = 11 : i64} {
  func.func @_spatial_sum_kernel(%arg0: i32, %arg1: i32, %arg2: i32, %arg3: memref<128x256xf32, #tpu.memory_space<vmem>>, %arg4: memref<1x128x128xf32, #tpu.memory_space<vmem>>) attributes {dimension_semantics = [#tpu.dimension_semantics<parallel>, #tpu.dimension_semantics<parallel>, #tpu.dimension_semantics<arbitrary>], iteration_bounds = array<i64: 1, 1, 1>, scalar_prefetch = 0 : i64, scratch_operands = 0 : i64, tpu.core_type = #tpu.core_type<tc>, window_params = [{transform_indices = @transform_0, window_bounds = array<i64: 128, 256>}, {transform_indices = @transform_1, window_bounds = array<i64: 1, 128, 128>}]} {
    %c0_i32 = arith.constant 0 : i32
    %0 = arith.cmpi eq, %arg2, %c0_i32 : i32
    %1 = arith.extui %0 : i1 to i32
    %c0_i32_0 = arith.constant 0 : i32
    %2 = arith.cmpi ne, %1, %c0_i32_0 : i32
    scf.if %2 {
      %cst = arith.constant 0.000000e+00 : f32
      %11 = vector.broadcast %cst : f32 to vector<1x128x128xf32>
      %c0 = arith.constant 0 : index
      %c0_4 = arith.constant 0 : index
      %c0_5 = arith.constant 0 : index
      %12 = vector.load %arg4[%c0, %c0_4, %c0_5] : memref<1x128x128xf32, #tpu.memory_space<vmem>>, vector<1x128x128xf32>
      tpu.vector_store %arg4[%c0, %c0_4, %c0_5], %11 {strides = array<i32>} : memref<1x128x128xf32, #tpu.memory_space<vmem>>, vector<1x128x128xf32>,
    } else {
    }
    %c1_i32 = arith.constant 1 : i32
    %3 = arith.muli %arg0, %c1_i32 : i32
    %4 = arith.addi %3, %arg2 : i32
    %c0_i32_1 = arith.constant 0 : i32
    %5 = arith.cmpi eq, %4, %c0_i32_1 : i32
    %true = arith.constant true
    %6 = arith.xori %5, %true : i1
    %7 = arith.extui %6 : i1 to i32
    %c0_i32_2 = arith.constant 0 : i32
    %8 = arith.cmpi ne, %7, %c0_i32_2 : i32
    scf.if %8 {
      %c0 = arith.constant 0 : index
      %c0_4 = arith.constant 0 : index
      %11 = vector.load %arg3[%c0, %c0_4] : memref<128x256xf32, #tpu.memory_space<vmem>>, vector<128x128xf32>
      %c0_5 = arith.constant 0 : index
      %c128 = arith.constant 128 : index
      %12 = vector.load %arg3[%c0_5, %c128] : memref<128x256xf32, #tpu.memory_space<vmem>>, vector<128x128xf32>
      %13 = arith.addf %11, %12 : vector<128x128xf32>
      %c0_6 = arith.constant 0 : index
      %c0_7 = arith.constant 0 : index
      %c0_8 = arith.constant 0 : index
      %14 = vector.load %arg4[%c0_6, %c0_7, %c0_8] : memref<1x128x128xf32, #tpu.memory_space<vmem>>, vector<1x128x128xf32>
      %15 = vector.shape_cast %13 : vector<128x128xf32> to vector<1x128x128xf32>
      %16 = arith.addf %14, %15 : vector<1x128x128xf32>
      %c0_9 = arith.constant 0 : index
      %c0_10 = arith.constant 0 : index
      %c0_11 = arith.constant 0 : index
      %17 = vector.load %arg4[%c0_9, %c0_10, %c0_11] : memref<1x128x128xf32, #tpu.memory_space<vmem>>, vector<1x128x128xf32>
      tpu.vector_store %arg4[%c0_9, %c0_10, %c0_11], %16 {strides = array<i32>} : memref<1x128x128xf32, #tpu.memory_space<vmem>>, vector<1x128x128xf32>,
    } else {
    }
    %9 = arith.extui %5 : i1 to i32
    %c0_i32_3 = arith.constant 0 : i32
    %10 = arith.cmpi ne, %9, %c0_i32_3 : i32
    scf.if %10 {
      %c0 = arith.constant 0 : index
      %c0_4 = arith.constant 0 : index
      %11 = vector.load %arg3[%c0, %c0_4] : memref<128x256xf32, #tpu.memory_space<vmem>>, vector<128x128xf32>
      %c0_5 = arith.constant 0 : index
      %c128 = arith.constant 128 : index
      %12 = vector.load %arg3[%c0_5, %c128] : memref<128x256xf32, #tpu.memory_space<vmem>>, vector<128x128xf32>
      %13 = tpu.iota {dimensions = array<i32: 1>} : vector<1x128xi32>
      %c128_i32 = arith.constant 128 : i32
      %14 = vector.broadcast %c128_i32 : i32 to vector<1x128xi32>
      %15 = arith.addi %14, %13 : vector<1x128xi32>
      %c225_i32 = arith.constant 225 : i32
      %16 = vector.broadcast %c225_i32 : i32 to vector<1x128xi32>
      %17 = arith.cmpi slt, %15, %16 : vector<1x128xi32>
      %cst = arith.constant 0.000000e+00 : f32
      %18 = vector.shape_cast %17 : vector<1x128xi1> to vector<1x128xi1>
      %19 = vector.broadcast %18 : vector<1x128xi1> to vector<128x128xi1>
      %20 = vector.broadcast %cst : f32 to vector<128x128xf32>
      %21 = arith.select %19, %12, %20 : vector<128x128xi1>, vector<128x128xf32>
      %22 = arith.addf %11, %21 : vector<128x128xf32>
      %c0_6 = arith.constant 0 : index
      %c0_7 = arith.constant 0 : index
      %c0_8 = arith.constant 0 : index
      %23 = vector.load %arg4[%c0_6, %c0_7, %c0_8] : memref<1x128x128xf32, #tpu.memory_space<vmem>>, vector<1x128x128xf32>
      %24 = vector.shape_cast %22 : vector<128x128xf32> to vector<1x128x128xf32>
      %25 = arith.addf %23, %24 : vector<1x128x128xf32>
      %c0_9 = arith.constant 0 : index
      %c0_10 = arith.constant 0 : index
      %c0_11 = arith.constant 0 : index
      %26 = vector.load %arg4[%c0_9, %c0_10, %c0_11] : memref<1x128x128xf32, #tpu.memory_space<vmem>>, vector<1x128x128xf32>
      tpu.vector_store %arg4[%c0_9, %c0_10, %c0_11], %25 {strides = array<i32>} : memref<1x128x128xf32, #tpu.memory_space<vmem>>, vector<1x128x128xf32>,
    } else {
    }
    return
  }
  func.func @transform_0(%arg0: i32, %arg1: i32, %arg2: i32) -> (i32, i32) {
    %c1_i32 = arith.constant 1 : i32
    %0 = arith.muli %arg0, %c1_i32 : i32
    %1 = arith.addi %0, %arg2 : i32
    %c0_i32 = arith.constant 0 : i32
    return %arg1, %1 : i32, i32
  }
  func.func @transform_1(%arg0: i32, %arg1: i32, %arg2: i32) -> (i32, i32, i32) {
    %c0_i32 = arith.constant 0 : i32
    %c0_i32_0 = arith.constant 0 : i32
    return %arg0, %arg1, %c0_i32 : i32, i32, i32
  }
}

module attributes {stable_mosaic.version = 11 : i64} {
  func.func @_mlp_bn_kernel(%arg0: memref<2x64xf32, #tpu.memory_space<vmem>>, %arg1: memref<64x4xf32, #tpu.memory_space<vmem>>, %arg2: memref<1x4xf32, #tpu.memory_space<vmem>>, %arg3: memref<4x64xf32, #tpu.memory_space<vmem>>, %arg4: memref<1x64xf32, #tpu.memory_space<vmem>>, %arg5: memref<1x64xf32, #tpu.memory_space<vmem>>, %arg6: memref<1x64xf32, #tpu.memory_space<vmem>>, %arg7: memref<2x64xf32, #tpu.memory_space<vmem>>) attributes {dimension_semantics = [], scalar_prefetch = 0 : i64, scratch_operands = 0 : i64, tpu.core_type = #tpu.core_type<tc>} {
    %c0 = arith.constant 0 : index
    %c0_0 = arith.constant 0 : index
    %0 = vector.load %arg0[%c0, %c0_0] : memref<2x64xf32, #tpu.memory_space<vmem>>, vector<2x64xf32>
    %c0_1 = arith.constant 0 : index
    %c0_2 = arith.constant 0 : index
    %1 = vector.load %arg1[%c0_1, %c0_2] : memref<64x4xf32, #tpu.memory_space<vmem>>, vector<64x4xf32>
    %cst = arith.constant dense<0.000000e+00> : vector<2x4xf32>
    %2 = tpu.matmul %0, %1, %cst {dimension_numbers = #tpu.dot_dimension_numbers<[1], [0], [0], [1], [0, 0, 1, 1], [], []>} : vector<2x64xf32>, vector<64x4xf32>, vector<2x4xf32> -> vector<2x4xf32>
    %c0_3 = arith.constant 0 : index
    %c0_4 = arith.constant 0 : index
    %3 = vector.load %arg2[%c0_3, %c0_4] : memref<1x4xf32, #tpu.memory_space<vmem>>, vector<1x4xf32>
    %4 = vector.broadcast %3 : vector<1x4xf32> to vector<2x4xf32>
    %5 = arith.addf %2, %4 : vector<2x4xf32>
    %cst_5 = arith.constant 0.000000e+00 : f32
    %6 = vector.broadcast %cst_5 : f32 to vector<2x4xf32>
    %7 = arith.maximumf %5, %6 : vector<2x4xf32>
    %c0_6 = arith.constant 0 : index
    %c0_7 = arith.constant 0 : index
    %8 = vector.load %arg3[%c0_6, %c0_7] : memref<4x64xf32, #tpu.memory_space<vmem>>, vector<4x64xf32>
    %cst_8 = arith.constant dense<0.000000e+00> : vector<2x64xf32>
    %9 = tpu.matmul %7, %8, %cst_8 {dimension_numbers = #tpu.dot_dimension_numbers<[1], [0], [0], [1], [0, 0, 1, 1], [], []>} : vector<2x4xf32>, vector<4x64xf32>, vector<2x64xf32> -> vector<2x64xf32>
    %c0_9 = arith.constant 0 : index
    %c0_10 = arith.constant 0 : index
    %10 = vector.load %arg4[%c0_9, %c0_10] : memref<1x64xf32, #tpu.memory_space<vmem>>, vector<1x64xf32>
    %11 = vector.broadcast %10 : vector<1x64xf32> to vector<2x64xf32>
    %12 = arith.addf %9, %11 : vector<2x64xf32>
    %cst_11 = arith.constant dense<0.000000e+00> : vector<64xf32>
    %13 = vector.multi_reduction <add>, %12, %cst_11 [0] : vector<2x64xf32> to vector<64xf32>
    %14 = vector.shape_cast %13 : vector<64xf32> to vector<1x64xf32>
    %cst_12 = arith.constant 2.000000e+00 : f32
    %15 = vector.broadcast %cst_12 : f32 to vector<1x64xf32>
    %16 = arith.divf %14, %15 : vector<1x64xf32>
    %17 = vector.broadcast %16 : vector<1x64xf32> to vector<2x64xf32>
    %18 = arith.subf %12, %17 : vector<2x64xf32>
    %19 = arith.mulf %18, %18 : vector<2x64xf32>
    %cst_13 = arith.constant dense<0.000000e+00> : vector<64xf32>
    %20 = vector.multi_reduction <add>, %19, %cst_13 [0] : vector<2x64xf32> to vector<64xf32>
    %21 = vector.shape_cast %20 : vector<64xf32> to vector<1x64xf32>
    %cst_14 = arith.constant 2.000000e+00 : f32
    %22 = vector.broadcast %cst_14 : f32 to vector<1x64xf32>
    %23 = arith.divf %21, %22 : vector<1x64xf32>
    %24 = vector.broadcast %16 : vector<1x64xf32> to vector<2x64xf32>
    %25 = arith.subf %12, %24 : vector<2x64xf32>
    %cst_15 = arith.constant 9.99999974E-6 : f32
    %26 = vector.broadcast %cst_15 : f32 to vector<1x64xf32>
    %27 = arith.addf %23, %26 : vector<1x64xf32>
    %28 = math.rsqrt %27 : vector<1x64xf32>
    %29 = vector.broadcast %28 : vector<1x64xf32> to vector<2x64xf32>
    %30 = arith.mulf %25, %29 : vector<2x64xf32>
    %c0_16 = arith.constant 0 : index
    %c0_17 = arith.constant 0 : index
    %31 = vector.load %arg5[%c0_16, %c0_17] : memref<1x64xf32, #tpu.memory_space<vmem>>, vector<1x64xf32>
    %32 = vector.broadcast %31 : vector<1x64xf32> to vector<2x64xf32>
    %33 = arith.mulf %30, %32 : vector<2x64xf32>
    %c0_18 = arith.constant 0 : index
    %c0_19 = arith.constant 0 : index
    %34 = vector.load %arg6[%c0_18, %c0_19] : memref<1x64xf32, #tpu.memory_space<vmem>>, vector<1x64xf32>
    %35 = vector.broadcast %34 : vector<1x64xf32> to vector<2x64xf32>
    %36 = arith.addf %33, %35 : vector<2x64xf32>
    %c0_20 = arith.constant 0 : index
    %c0_21 = arith.constant 0 : index
    %37 = vector.load %arg7[%c0_20, %c0_21] : memref<2x64xf32, #tpu.memory_space<vmem>>, vector<2x64xf32>
    tpu.vector_store %arg7[%c0_20, %c0_21], %36 {strides = array<i32>} : memref<2x64xf32, #tpu.memory_space<vmem>>, vector<2x64xf32>,
    return
  }
}

</mosaic_0001>

<bundles_post_ra>
// kernel: channel_gate.2
= control target key start
LH: loop header
LB: loop body
LE: loop exit
PB: predicated region body
PF: predicated region fallthrough
CT: control target
= control target key end

     0   :  { %v187_v0 = vlaneseq  ;;  %s473_s0 = inlined_call_operand.vmem [shape: f32[128,225], index: 0, kind: input, shape index: {}]   ;;  %s474_s1 = inlined_call_operand.vmem [shape: f32[1,128,128], index: 1, kind: output, shape index: {}]  }
   0x1   :  { %v155_v2 = vld [vmem:[%s473_s0] sm:$0xff]  ;;  %v171_v3 = vld [vmem:[%s473_s0 + $0x8] sm:$0xff]  ;;  %v156_v4 = vld [vmem:[%s473_s0 + $0x10] sm:$0xff] }
   0x2   :  { %v188_v1 = vand.u32 127, %v187_v0  ;;  %v172_v6 = vld [vmem:[%s473_s0 + $0x18] sm:$0xff]  ;;  %v173_v7 = vld [vmem:[%s473_s0 + $0x28] sm:$0xff]  ;;  %v157_v9 = vld [vmem:[%s473_s0 + $0x20] sm:$0xff] }
   0x3   :  { %v174_v8 = vld [vmem:[%s473_s0 + $0x38] sm:$0xff]  ;;  %v158_v10 = vld [vmem:[%s473_s0 + $0x30] sm:$0xff]  ;;  %v175_v11 = vld [vmem:[%s473_s0 + $0x48] sm:$0xff] }
   0x4   :  { %v303_v5 = vadd.s32 128, %v188_v1  ;;  %v159_v12 = vld [vmem:[%s473_s0 + $0x40] sm:$0xff]  ;;  %v176_v13 = vld [vmem:[%s473_s0 + $0x58] sm:$0xff]  ;;  %v177_v14 = vld [vmem:[%s473_s0 + $0x68] sm:$0xff] }
   0x5   :  { %v178_v15 = vld [vmem:[%s473_s0 + $0x78] sm:$0xff]  ;;  %v160_v20 = vld [vmem:[%s473_s0 + $0x50] sm:$0xff]  ;;  %v161_v21 = vld [vmem:[%s473_s0 + $0x60] sm:$0xff] }
   0x6   :  { %vm190_vm0 = vcmp.lt.s32.totalorder %v303_v5, 225  ;;  %v162_v26 = vld [vmem:[%s473_s0 + $0x70] sm:$0xff]  ;;  %v179_v27 = vld [vmem:[%s473_s0 + $0x88] sm:$0xff]  ;;  %v180_v28 = vld [vmem:[%s473_s0 + $0x98] sm:$0xff] }
   0x7   :  { %v193_v16 = vsel %vm190_vm0, %v171_v3, 0.0  ;;  %v194_v17 = vsel %vm190_vm0, %v172_v6, 0.0  ;;  %v195_v18 = vsel %vm190_vm0, %v173_v7, 0.0  ;;  %v196_v19 = vsel %vm190_vm0, %v174_v8, 0.0  ;;  %v181_v33 = vld [vmem:[%s473_s0 + $0xa8] sm:$0xff]  ;;  %v182_v34 = vld [vmem:[%s473_s0 + $0xb8] sm:$0xff] }
   0x8   :  { %v209_v22 = vadd.f32 %v193_v16, %v155_v2  ;;  %v210_v23 = vadd.f32 %v194_v17, %v156_v4  ;;  %v211_v24 = vadd.f32 %v195_v18, %v157_v9  ;;  %v212_v25 = vadd.f32 %v196_v19, %v158_v10  ;;  %v163_v35 = vld [vmem:[%s473_s0 + $0x80] sm:$0xff]  ;;  %v164_v36 = vld [vmem:[%s473_s0 + $0x90] sm:$0xff]  ;;  %v183_v43 = vld [vmem:[%s473_s0 + $0xc8] sm:$0xff] }
   0x9   :  { %v197_v29 = vsel %vm190_vm0, %v175_v11, 0.0  ;;  %v198_v30 = vsel %vm190_vm0, %v176_v13, 0.0  ;;  %v199_v31 = vsel %vm190_vm0, %v177_v14, 0.0  ;;  %v200_v32 = vsel %vm190_vm0, %v178_v15, 0.0  ;;  %v165_v37 = vld [vmem:[%s473_s0 + $0xa0] sm:$0xff]  ;;  %v166_v42 = vld [vmem:[%s473_s0 + $0xb0] sm:$0xff] }
   0xa   :  { %v213_v38 = vadd.f32 %v197_v29, %v159_v12  ;;  %v214_v39 = vadd.f32 %v198_v30, %v160_v20  ;;  %v215_v40 = vadd.f32 %v199_v31, %v161_v21  ;;  %v216_v41 = vadd.f32 %v200_v32, %v162_v26  ;;  %v184_v44 = vld [vmem:[%s473_s0 + $0xd8] sm:$0xff]  ;;  %257 = vst [vmem:[%s474_s1] sm:$0xff] %v209_v22  ;;  %v185_v49 = vld [vmem:[%s473_s0 + $0xe8] sm:$0xff]  ;;  %v167_v51 = vld [vmem:[%s473_s0 + $0xc0] sm:$0xff] }
   0xb   :  { %258 = vst [vmem:[%s474_s1 + $0x8] sm:$0xff] %v210_v23  ;;  %259 = vst [vmem:[%s474_s1 + $0x10] sm:$0xff] %v211_v24  ;;  %v201_v45 = vsel %vm190_vm0, %v179_v27, 0.0  ;;  %v202_v46 = vsel %vm190_vm0, %v180_v28, 0.0  ;;  %v203_v47 = vsel %vm190_vm0, %v181_v33, 0.0  ;;  %v204_v48 = vsel %vm190_vm0, %v182_v34, 0.0 }
   0xc   :  { %260 = vst [vmem:[%s474_s1 + $0x18] sm:$0xff] %v212_v25  ;;  %v186_v50 = vld [vmem:[%s473_s0 + $0xf8] sm:$0xff]  ;;  %v217_v52 = vadd.f32 %v201_v45, %v163_v35  ;;  %v218_v53 = vadd.f32 %v202_v46, %v164_v36  ;;  %v219_v54 = vadd.f32 %v203_v47, %v165_v37  ;;  %v220_v55 = vadd.f32 %v204_v48, %v166_v42  ;;  %v168_v56 = vld [vmem:[%s473_s0 + $0xd0] sm:$0xff]  ;;  %v169_v57 = vld [vmem:[%s473_s0 + $0xe0] sm:$0xff] }
   0xd   :  { %v170_v58 = vld [vmem:[%s473_s0 + $0xf0] sm:$0xff]  ;;  %261 = vst [vmem:[%s474_s1 + $0x20] sm:$0xff] %v213_v38  ;;  %262 = vst [vmem:[%s474_s1 + $0x28] sm:$0xff] %v214_v39  ;;  %v205_v59 = vsel %vm190_vm0, %v183_v43, 0.0  ;;  %v206_v60 = vsel %vm190_vm0, %v184_v44, 0.0  ;;  %v207_v61 = vsel %vm190_vm0, %v185_v49, 0.0 }
   0xe   :  { %263 = vst [vmem:[%s474_s1 + $0x30] sm:$0xff] %v215_v40  ;;  %264 = vst [vmem:[%s474_s1 + $0x38] sm:$0xff] %v216_v41  ;;  %v208_v62 = vsel %vm190_vm0, %v186_v50, 0.0  ;;  %v221_v63 = vadd.f32 %v205_v59, %v167_v51  ;;  %v222_v0 = vadd.f32 %v206_v60, %v168_v56  ;;  %v223_v1 = vadd.f32 %v207_v61, %v169_v57 }
   0xf   :  { %v224_v2 = vadd.f32 %v208_v62, %v170_v58  ;;  %265 = vst [vmem:[%s474_s1 + $0x40] sm:$0xff] %v217_v52  ;;  %266 = vst [vmem:[%s474_s1 + $0x48] sm:$0xff] %v218_v53 }
  0x10   :  { %267 = vst [vmem:[%s474_s1 + $0x50] sm:$0xff] %v219_v54  ;;  %268 = vst [vmem:[%s474_s1 + $0x58] sm:$0xff] %v220_v55 }
  0x11   :  { %269 = vst [vmem:[%s474_s1 + $0x60] sm:$0xff] %v221_v63  ;;  %270 = vst [vmem:[%s474_s1 + $0x68] sm:$0xff] %v222_v0 }
  0x12   :  { %271 = vst [vmem:[%s474_s1 + $0x70] sm:$0xff] %v223_v1  ;;  %272 = vst [vmem:[%s474_s1 + $0x78] sm:$0xff] %v224_v2 }

// kernel: channel_gate.3
= control target key start
LH: loop header
LB: loop body
LE: loop exit
PB: predicated region body
PF: predicated region fallthrough
CT: control target
= control target key end

     0   :  { %v293_v0 = vmov 0.0   ;;  %vm294_vm0 = vmmov 0   ;;  %vm42_vm1 = vcmask 523264   ;;  %vm129_vm2 = vcmask 1043456   ;;  %s383_s1 = inlined_call_operand.vmem [shape: f32[64,4], index: 1, kind: input, shape index: {}]   ;;  %s384_s0 = inlined_call_operand.vmem [shape: f32[2,64], index: 0, kind: input, shape index: {}]   ;;  %s385_s3 = inlined_call_operand.vmem [shape: f32[4,64], index: 3, kind: input, shape index: {}]   ;;  %s386_s2 = inlined_call_operand.vmem [shape: f32[1,4], index: 2, kind: input, shape index: {}]   ;;  %s387_s4 = inlined_call_operand.vmem [shape: f32[1,64], index: 4, kind: input, shape index: {}]   ;;  %s388_s5 = inlined_call_operand.vmem [shape: f32[1,64], index: 5, kind: input, shape index: {}]   ;;  %s389_s6 = inlined_call_operand.vmem [shape: f32[1,64], index: 6, kind: input, shape index: {}]   ;;  %s390_s7 = inlined_call_operand.vmem [shape: f32[2,64], index: 7, kind: output, shape index: {}]  }
   0x1   :  { %265 = vmatprep.subr.mxu0 %v293_v0  ;;  %v34_v1 = vld [vmem:[%s383_s1 + $0x38] sm:$0xff]  ;;  %v33_v2 = vld [vmem:[%s383_s1 + $0x30] sm:$0xff]  ;;  %281 = vmatprep.mubr.msk.f32.mxu0 %vm294_vm0, %v293_v0  ;;  %v32_v3 = vld [vmem:[%s383_s1 + $0x28] sm:$0xff]  ;;  %vm125_vm3 = vcmask 31744   ;;  %vm203_vm4 = vcmask 517120  }
   0x2   :  { %266 = vmatpush3.msra.mxu0 %v34_v1  ;;  %284 = vmatprep.subr.mxu1 %v293_v0  ;;  %v31_v4 = vld [vmem:[%s383_s1 + $0x20] sm:$0xff]  ;;  %v30_v5 = vld [vmem:[%s383_s1 + $0x18] sm:$0xff]  ;;  %v29_v6 = vld [vmem:[%s383_s1 + $0x10] sm:$0xff] }
   0x3   :  { %267 = vmatprep.subr.mxu0 %v293_v0  ;;  %286 = vmatprep.mubr.msk.f32.mxu1 %vm294_vm0, %v293_v0  ;;  %v28_v7 = vld [vmem:[%s383_s1 + $0x8] sm:$0xff]  ;;  %v27_v8 = vld [vmem:[%s383_s1] sm:$0xff] }
   0x4   :  { %268 = vmatpush3.msra.mxu0 %v33_v2  ;;  %v26_v9 = vld [vmem:[%s384_s0] sm:$0x3] }
   0x5   :  { %269 = vmatprep.subr.mxu0 %v293_v0  ;;  %v117_v10 = vld [vmem:[%s385_s3] sm:$0xf] }
   0x6   :  { %270 = vmatpush3.msra.mxu0 %v32_v3  ;;  %285 = vmatpush3.msk.msra.mxu1 %vm129_vm2, %v117_v10  ;;  %v247_v11 = vld [vmem:[%s386_s2] ss:$0 sm:$0xff] }
   0x7   :  { %271 = vmatprep.subr.mxu0 %v293_v0  ;;  %v249_v16 = vld [vmem:[%s387_s4] ss:$0 sm:$0xff] }
   0x8   :  { %272 = vmatpush3.msra.mxu0 %v31_v4  ;;  %v252_v40 = vld [vmem:[%s388_s5] ss:$0 sm:$0xff] }
   0x9   :  { %273 = vmatprep.subr.mxu0 %v293_v0  ;;  %v253_v42 = vld [vmem:[%s389_s6] ss:$0 sm:$0xff] }
   0xa   :  { %274 = vmatpush3.msra.mxu0 %v30_v5 }
   0xb   :  { %275 = vmatprep.subr.mxu0 %v293_v0 }
   0xc   :  { %276 = vmatpush3.msra.mxu0 %v29_v6 }
   0xd   :  { %277 = vmatprep.subr.mxu0 %v293_v0 }
   0xe   :  { %278 = vmatpush3.msra.mxu0 %v28_v7 }
   0xf   :  { %279 = vmatprep.subr.mxu0 %v293_v0 }
  0x10   :  { %280 = vmatpush3.msra.mxu0 %v27_v8 }
  0x11   :  { %282 = vmatmul.mubr.msk.f32.vlgmr.msra.gmra.mxu0 %vm42_vm1, %v26_v9 }
  0xd1   :  { %v112_v12 = vpop.f32.mrf.mxu0 }
  0xd2   :  { %v113_v13 = vadd.f32 %v247_v11, %v112_v12 }
  0xd3   :  { %v283_v14 = vpop.f32.mrf.mxu0 }
  0xd4   :  { %v116_v15 = vmax.f32 %v113_v13, 0.0 }
  0xd6   :  { %287 = vmatmul.mubr.msk.f32.vlgmr.msra.gmra.mxu1 %vm125_vm3, %v116_v15 }
 0x196   :  { %v199_v17 = vpop.f32.mrf.mxu1 }
 0x197   :  { %v200_v18 = vadd.f32 %v249_v16, %v199_v17 }
 0x198   :  { %v288_v19 = vpop.f32.mrf.mxu1 }
 0x199   :  { %v204_v20 = vsel %vm203_vm4, %v200_v18, 0.0 }
 0x19a   :  { %v205_v21 = vrot.slane %v204_v20, 4 }
 0x19c   :  { %v206_v22 = vadd.f32 %v205_v21, %v204_v20 }
 0x19e   :  { %v207_v23 = vrot.slane %v206_v22, 2 }
 0x1a0   :  { %v208_v24 = vadd.f32 %v207_v23, %v206_v22 }
 0x1a2   :  { %v209_v25 = vrot.slane %v208_v24, 1 }
 0x1a4   :  { %v210_v26 = vadd.f32 %v209_v25, %v208_v24 }
 0x1a6   :  { %v212_v27 = vmul.f32 0.5, %v210_v26 }
 0x1a8   :  { %v213_v28 = vsub.f32 %v200_v18, %v212_v27 }
 0x1aa   :  { %v214_v29 = vmul.f32 %v213_v28, %v213_v28 }
 0x1ac   :  { %v215_v30 = vsel %vm203_vm4, %v214_v29, 0.0 }
 0x1ad   :  { %v216_v31 = vrot.slane %v215_v30, 4 }
 0x1af   :  { %v217_v32 = vadd.f32 %v216_v31, %v215_v30 }
 0x1b1   :  { %v218_v33 = vrot.slane %v217_v32, 2 }
 0x1b3   :  { %v219_v34 = vadd.f32 %v218_v33, %v217_v32 }
 0x1b5   :  { %v220_v35 = vrot.slane %v219_v34, 1 }
 0x1b7   :  { %v221_v36 = vadd.f32 %v220_v35, %v219_v34 }
 0x1b9   :  { %v222_v37 = vmul.f32 0.5, %v221_v36 }
 0x1bb   :  { %v223_v38 = vadd.f32 1e-05, %v222_v37 }
 0x1bd   :  { %291 = vrsqrt.f32 %v223_v38 }
 0x1ca   :  { %v292_v39 = vpop.eup %291 }
 0x1cb   :  { %v225_v41 = vmul.f32 %v292_v39, %v213_v28 }
 0x1cd   :  { %v233_v43 = vmul.f32 %v252_v40, %v225_v41 }
 0x1cf   :  { %v241_v44 = vadd.f32 %v253_v42, %v233_v43 }
 0x1d1   :  { %242 = vst.msk [vmem:[%s390_s7] sm:$0x3] %vm203_vm4, %v241_v44 }

</bundles_post_ra>
